<compile_context>
chip_gen: v5e
topology: v5e:2x2
jax: 0.10.0
libtpu: 0.0.40
codegen_flags: <defaults>
</compile_context>

<pallas_src>
import functools

import jax
import jax.numpy as jnp
from jax import lax
from jax.experimental import pallas as pl
from jax.experimental.pallas import tpu as pltpu

NEG_SLOPE = 0.01  # nn.LeakyReLU() default negative_slope


def _round_up(a, b):
    return (a + b - 1) // b * b


def _cout_tile(cout_pad):
    """Largest Cout tile <= 256 that divides the padded Cout (multiple of 8)."""
    for t in (256, 128, 64, 32, 16, 8):
        if t <= cout_pad and cout_pad % t == 0:
            return t
    return cout_pad


def _frame_geometry(Hv, Wv, max_unroll=12):
    """Frame = padded output spatial (Hv+2, Wv+2). Returns Hf, Wf, M, R, Lf."""
    Hf, Wf = Hv + 2, Wv + 2
    area = Hf * Wf
    m = max(Wf + 2, -(-area // max_unroll))
    M = _round_up(m, 128)
    M = min(M, _round_up(area, 128))
    M = max(M, _round_up(Wf + 2, 128))      # margin blocks must cover Wf+1 halo
    R = -(-area // M)                        # cdiv: ragged last row-group masked
    Lf = (R + 2) * M                         # one margin block front + back
    return Hf, Wf, M, R, Lf


# ----------------------------------------------------------------------------
# Pallas kernel: KxK "valid-on-frame" conv + bias + LeakyReLU, merged taps
# ----------------------------------------------------------------------------
def _conv_lrelu_kernel(x_ref, w_ref, b_ref, m_ref, o_ref, *, K, Wf, M, R):
    """One batch element x one Cout tile.

    x_ref : (1, Cin_p, Lf)     bf16 ActFlat input (whole image, resident)
    w_ref : (TCo, K*K*Cin_p)   bf16 merged-tap weights (resident)
    b_ref : (TCo, 1)           f32 bias
    m_ref : (1, Lf)            f32 interior mask (1.0 = real output position)
    o_ref : (1, TCo, Lf)       ActFlat output (bf16 or f32)
    """
    w = w_ref[...]
    b = b_ref[...]
    tco = o_ref.shape[1]

    # Deterministic margins (never *needed* by the consumer, but keep clean).
    zeros_blk = jnp.zeros((tco, M), o_ref.dtype)
    o_ref[0, :, pl.ds(0, M)] = zeros_blk
    o_ref[0, :, pl.ds((R + 1) * M, M)] = zeros_blk

    # Static unroll over row-groups -> every slice start is a Python int
    # (lane-aligned stores, no dynamic lane slicing).
    for rr in range(R):
        base = (rr + 1) * M - (Wf + 1)
        # One contiguous lane-shifted slab per tap; stack -> single MXU matmul
        # with contraction depth K*K*Cin_p (no per-tap accumulator RMW).
        slabs = [x_ref[0, :, pl.ds(base + dy * Wf + dx, M)]
                 for dy in range(K) for dx in range(K)]
        patch = jnp.concatenate(slabs, axis=0)                    # (K*K*Cin_p, M)
        acc = jnp.dot(w, patch, preferred_element_type=jnp.float32)   # (TCo, M)
        acc = acc + b                                              # f32 bias
        acc = jnp.where(acc >= 0.0, acc, NEG_SLOPE * acc)          # f32 LeakyReLU
        valid = m_ref[:, pl.ds((rr + 1) * M, M)] > 0.5             # (1, M)
        acc = jnp.where(valid, acc, 0.0)                           # zero pad rows/cols
        o_ref[0, :, pl.ds((rr + 1) * M, M)] = acc.astype(o_ref.dtype)


def _vmem_limit(cin_p, lf, tco, kkc, m, out_itemsize):
    need = (2 * cin_p * lf * 2               # input block (double-buffered)
            + 2 * tco * lf * out_itemsize    # output block (double-buffered)
            + 2 * tco * kkc * 2 + 2 * tco * 4
            + 4 * kkc * m * 2)               # patch + temporaries
    # Keep within v7x's 64 MiB physical VMEM; demo sizes land at the floor.
    return int(min(64 * 2**20, max(16 * 2**20, 2 * need + 2 * 2**20)))


def _conv_lrelu_actflat(x_flat, w_packed, b_packed, mask, *, K, Wf, M, R,
                        out_dtype):
    """Fused conv(+bias+LeakyReLU) layer on the ActFlat activation format."""
    N, cin_p, lf = x_flat.shape
    cout_p, kkc = w_packed.shape
    assert kkc == K * K * cin_p
    assert lf == (R + 2) * M

    tco = _cout_tile(cout_p)
    grid = (N, cout_p // tco)
    out_isz = jnp.dtype(out_dtype).itemsize

    kernel = functools.partial(_conv_lrelu_kernel, K=K, Wf=Wf, M=M, R=R)

    cost = pl.CostEstimate(
        flops=2 * N * cout_p * kkc * R * M,
        transcendentals=0,
        bytes_accessed=int(N * cin_p * lf * 2 + cout_p * kkc * 2
                           + N * cout_p * lf * out_isz),
    )

    return pl.pallas_call(
        kernel,
        out_shape=jax.ShapeDtypeStruct((N, cout_p, lf), out_dtype),
        grid_spec=pltpu.PrefetchScalarGridSpec(
            num_scalar_prefetch=0,
            grid=grid,
            in_specs=[
                # whole flat image per batch element; constant in g -> resident
                pl.BlockSpec((1, cin_p, lf), lambda n, g: (n, 0, 0)),
                # weights / bias / mask: small, (re)fetched cheaply
                pl.BlockSpec((tco, kkc), lambda n, g: (g, 0)),
                pl.BlockSpec((tco, 1), lambda n, g: (g, 0)),
                pl.BlockSpec((1, lf), lambda n, g: (0, 0)),
            ],
            out_specs=pl.BlockSpec((1, tco, lf), lambda n, g: (n, g, 0)),
        ),
        compiler_params=pltpu.CompilerParams(
            # both axes write disjoint blocks -> legal parallel (v7x megacore)
            dimension_semantics=("parallel", "parallel"),
            vmem_limit_bytes=_vmem_limit(cin_p, lf, tco, kkc, M, out_isz),
        ),
        cost_estimate=cost,
    )(x_flat, w_packed, b_packed, mask)


# ----------------------------------------------------------------------------
# ActFlat builders / weight packing
# ----------------------------------------------------------------------------
def _interior_mask(Hf, Wf, M, R, Lf):
    idx = jnp.arange(Lf, dtype=jnp.int32)
    f = idx - M
    hf = f // Wf
    wf = f - hf * Wf
    ok = ((f >= 0) & (f < Hf * Wf)
          & (hf >= 1) & (hf <= Hf - 2)
          & (wf >= 1) & (wf <= Wf - 2))
    return ok.astype(jnp.float32).reshape(1, Lf)


def _build_s2d_actflat(x_nchw, cin, cpad0, Hf, Wf, M, Lf):
    """cast + pad + space-to-depth + embed into ActFlat, one small XLA chain."""
    N = x_nchw.shape[0]
    H, W = x_nchw.shape[2], x_nchw.shape[3]
    Ho2, Wo2 = Hf - 2, Wf - 2
    x = x_nchw.astype(jnp.bfloat16)
    # conv padding (1,1) plus bottom/right zero rows so H,W become 2*(Ho2+1)
    ph = 2 * (Ho2 + 1) - (H + 2)
    pw = 2 * (Wo2 + 1) - (W + 2)
    xp = jnp.pad(x, ((0, 0), (0, 0), (1, 1 + ph), (1, 1 + pw)))
    H2p, W2p = Ho2 + 1, Wo2 + 1
    s2d = xp.reshape(N, cin, H2p, 2, W2p, 2)
    s2d = jnp.transpose(s2d, (0, 3, 5, 1, 2, 4)).reshape(N, 4 * cin, H2p, W2p)
    # pad channels to cpad0 and spatial to the (Hf, Wf) frame
    s2d = jnp.pad(s2d, ((0, 0), (0, cpad0 - 4 * cin), (0, 1), (0, 1)))
    flat = s2d.reshape(N, cpad0, Hf * Wf)
    return jnp.pad(flat, ((0, 0), (0, 0), (M, Lf - M - Hf * Wf)))


def _pack_w_s1(w_oihw, cin_pad, cout_pad):
    """3x3 stride-1 weights -> (Cout_pad, 9*Cin_pad), tap-major columns."""
    cout, cin = w_oihw.shape[0], w_oihw.shape[1]
    wt = jnp.transpose(w_oihw, (2, 3, 1, 0))                      # (dy,dx,ci,co)
    wt = jnp.pad(wt, ((0, 0), (0, 0), (0, cin_pad - cin), (0, cout_pad - cout)))
    return jnp.transpose(wt.reshape(9 * cin_pad, cout_pad)).astype(jnp.bfloat16)


def _pack_w_s2(w_oihw, cin_pad_eff, cout_pad):
    """3x3 stride-2 weights -> space-to-depth 2x2 form (Cout_pad, 4*cin_pad_eff)."""
    cout, cin = w_oihw.shape[0], w_oihw.shape[1]
    wp = jnp.pad(w_oihw, ((0, 0), (0, 0), (0, 1), (0, 1)))        # 3x3 -> 4x4
    wp = wp.reshape(cout, cin, 2, 2, 2, 2)                        # (co,ci,dy,py,dx,px)
    wt = jnp.transpose(wp, (2, 4, 3, 5, 1, 0))                    # (dy,dx,py,px,ci,co)
    wt = wt.reshape(4, 4 * cin, cout)
    wt = jnp.pad(wt, ((0, 0), (0, cin_pad_eff - 4 * cin), (0, cout_pad - cout)))
    return jnp.transpose(wt.reshape(4 * cin_pad_eff, cout_pad)).astype(jnp.bfloat16)


def _pack_bias(b, cout_pad):
    return jnp.pad(b, (0, cout_pad - b.shape[0])).reshape(cout_pad, 1).astype(jnp.float32)


# ----------------------------------------------------------------------------
# SpectralNorm weight preprocessing (power iteration, plain JAX)
# ----------------------------------------------------------------------------
def spectral_normalize(w, u0, n_power_iterations=1, eps=1e-12):
    # TODO(synk): PyTorch training mode updates the persistent u buffer; this
    # recomputes from u0 every call (eval-style behaviour).
    w_mat = w.reshape(w.shape[0], -1)
    u = u0 / (jnp.linalg.norm(u0) + eps)
    v = None
    for _ in range(n_power_iterations):
        v = w_mat.T @ u
        v = v / (jnp.linalg.norm(v) + eps)
        u = w_mat @ v
        u = u / (jnp.linalg.norm(u) + eps)
    sigma = u @ (w_mat @ v)
    return w / sigma


# ----------------------------------------------------------------------------
# `down` module: params + forward
# ----------------------------------------------------------------------------
def init_down_params(key, in_ch, out_ch):
    ks = jax.random.split(key, 9)

    def conv_init(kw, kb, cout, cin):
        fan_in = cin * 9
        bound = 1.0 / jnp.sqrt(fan_in)
        w = jax.random.uniform(kw, (cout, cin, 3, 3), jnp.float32, -bound, bound)
        b = jax.random.uniform(kb, (cout,), jnp.float32, -bound, bound)
        return w, b

    w0, b0 = conv_init(ks[0], ks[1], in_ch, in_ch)     # stride-2 conv
    w1, b1 = conv_init(ks[2], ks[3], out_ch, in_ch)    # double_conv #1
    w2, b2 = conv_init(ks[4], ks[5], out_ch, out_ch)   # double_conv #2
    u0 = jax.random.normal(ks[6], (in_ch,), jnp.float32)
    u1 = jax.random.normal(ks[7], (out_ch,), jnp.float32)
    u2 = jax.random.normal(ks[8], (out_ch,), jnp.float32)
    return dict(w0=w0, b0=b0, u0=u0,
                w1=w1, b1=b1, u1=u1,
                w2=w2, b2=b2, u2=u2)


def down_forward(x_nchw, params):
    """Equivalent of down(in_ch, out_ch).forward(x), x and output in NCHW."""
    N, cin, H, W = x_nchw.shape

    w0 = spectral_normalize(params["w0"], params["u0"])
    w1 = spectral_normalize(params["w1"], params["u1"])
    w2 = spectral_normalize(params["w2"], params["u2"])
    in_ch, out_ch = w0.shape[0], w1.shape[0]

    Ho2, Wo2 = (H + 1) // 2, (W + 1) // 2          # PyTorch stride-2 pad-1 output
    Hf, Wf, M, R, Lf = _frame_geometry(Ho2, Wo2)
    mask = _interior_mask(Hf, Wf, M, R, Lf)

    c0_in = _round_up(4 * cin, 8)                  # space-to-depth channels
    c0_out = _round_up(in_ch, 8)
    c1_out = _round_up(out_ch, 8)

    # layer 0: SN(Conv 3x3, pad=1, stride=2) + LeakyReLU (as s2d + 2x2 conv)
    a0 = _build_s2d_actflat(x_nchw, cin, c0_in, Hf, Wf, M, Lf)
    y0 = _conv_lrelu_actflat(a0, _pack_w_s2(w0, c0_in, c0_out),
                             _pack_bias(params["b0"], c0_out), mask,
                             K=2, Wf=Wf, M=M, R=R, out_dtype=jnp.bfloat16)
    # double_conv: (SN(Conv 3x3, pad=1) + LeakyReLU) x 2, chained directly
    # in ActFlat format (no pad / slice / transpose passes between layers).
    y1 = _conv_lrelu_actflat(y0, _pack_w_s1(w1, c0_out, c1_out),
                             _pack_bias(params["b1"], c1_out), mask,
                             K=3, Wf=Wf, M=M, R=R, out_dtype=jnp.bfloat16)
    y2 = _conv_lrelu_actflat(y1, _pack_w_s1(w2, c1_out, c1_out),
                             _pack_bias(params["b2"], c1_out), mask,
                             K=3, Wf=Wf, M=M, R=R, out_dtype=jnp.float32)

    # Extract the valid region; already channel-major -> output is NCHW.
    out = y2[:, :out_ch, M:M + Hf * Wf].reshape(N, out_ch, Hf, Wf)
    return out[:, :, 1:Hf - 1, 1:Wf - 1]


if __name__ == "__main__":
    key = jax.random.PRNGKey(0)
    k_x, k_p = jax.random.split(key)

    N, in_ch, H, W = 2, 4, 16, 16
    out_ch = 8

    x = jax.random.normal(k_x, (N, in_ch, H, W), jnp.float32)
    params = init_down_params(k_p, in_ch, out_ch)

    y = jax.jit(down_forward)(x, params)
    y = jax.block_until_ready(y)

    assert y.shape == (N, out_ch, H // 2, W // 2), y.shape
    assert jnp.all(jnp.isfinite(y))
    print("KERNEL_OK")
</pallas_src>

<mosaic_0001>
module attributes {stable_mosaic.version = 11 : i64} {
  func.func @_conv_lrelu_kernel(%arg0: i32, %arg1: i32, %arg2: memref<1x8x384xbf16, #tpu.memory_space<vmem>>, %arg3: memref<8x72xbf16, #tpu.memory_space<vmem>>, %arg4: memref<8x1xf32, #tpu.memory_space<vmem>>, %arg5: memref<1x384xf32, #tpu.memory_space<vmem>>, %arg6: memref<1x8x384xbf16, #tpu.memory_space<vmem>>) attributes {dimension_semantics = [#tpu.dimension_semantics<parallel>, #tpu.dimension_semantics<parallel>], iteration_bounds = array<i64: 2, 1>, scalar_prefetch = 0 : i64, scratch_operands = 0 : i64, tpu.core_type = #tpu.core_type<tc>, window_params = [{transform_indices = @transform_0, window_bounds = array<i64: 1, 8, 384>}, {transform_indices = @transform_1, window_bounds = array<i64: 8, 72>}, {transform_indices = @transform_2, window_bounds = array<i64: 8, 1>}, {pipeline_mode = #tpu.pipeline_mode<synchronous>, transform_indices = @transform_3, window_bounds = array<i64: 1, 384>}, {transform_indices = @transform_4, window_bounds = array<i64: 1, 8, 384>}]} {
    %c0 = arith.constant 0 : index
    %c0_0 = arith.constant 0 : index
    %0 = vector.load %arg3[%c0, %c0_0] : memref<8x72xbf16, #tpu.memory_space<vmem>>, vector<8x72xbf16>
    %c0_1 = arith.constant 0 : index
    %c0_2 = arith.constant 0 : index
    %1 = vector.load %arg4[%c0_1, %c0_2] : memref<8x1xf32, #tpu.memory_space<vmem>>, vector<8x1xf32>
    %cst = arith.constant 0.000000e+00 : bf16
    %2 = vector.broadcast %cst : bf16 to vector<8x128xbf16>
    %c0_3 = arith.constant 0 : index
    %c0_4 = arith.constant 0 : index
    %c0_5 = arith.constant 0 : index
    %3 = vector.load %arg6[%c0_3, %c0_4, %c0_5] : memref<1x8x384xbf16, #tpu.memory_space<vmem>>, vector<1x8x128xbf16>
    %4 = vector.shape_cast %3 : vector<1x8x128xbf16> to vector<8x128xbf16>
    %5 = vector.shape_cast %2 : vector<8x128xbf16> to vector<1x8x128xbf16>
    tpu.vector_store %arg6[%c0_3, %c0_4, %c0_5], %5 {strides = array<i32>} : memref<1x8x384xbf16, #tpu.memory_space<vmem>>, vector<1x8x128xbf16>,
    %c0_6 = arith.constant 0 : index
    %c0_7 = arith.constant 0 : index
    %c256 = arith.constant 256 : index
    %6 = vector.load %arg6[%c0_6, %c0_7, %c256] : memref<1x8x384xbf16, #tpu.memory_space<vmem>>, vector<1x8x128xbf16>
    %7 = vector.shape_cast %6 : vector<1x8x128xbf16> to vector<8x128xbf16>
    %8 = vector.shape_cast %2 : vector<8x128xbf16> to vector<1x8x128xbf16>
    tpu.vector_store %arg6[%c0_6, %c0_7, %c256], %8 {strides = array<i32>} : memref<1x8x384xbf16, #tpu.memory_space<vmem>>, vector<1x8x128xbf16>,
    %c0_8 = arith.constant 0 : index
    %c0_9 = arith.constant 0 : index
    %c117 = arith.constant 117 : index
    %9 = vector.load %arg2[%c0_8, %c0_9, %c117] : memref<1x8x384xbf16, #tpu.memory_space<vmem>>, vector<1x8x128xbf16>
    %10 = vector.shape_cast %9 : vector<1x8x128xbf16> to vector<8x128xbf16>
    %c0_10 = arith.constant 0 : index
    %c0_11 = arith.constant 0 : index
    %c118 = arith.constant 118 : index
    %11 = vector.load %arg2[%c0_10, %c0_11, %c118] : memref<1x8x384xbf16, #tpu.memory_space<vmem>>, vector<1x8x128xbf16>
    %12 = vector.shape_cast %11 : vector<1x8x128xbf16> to vector<8x128xbf16>
    %c0_12 = arith.constant 0 : index
    %c0_13 = arith.constant 0 : index
    %c119 = arith.constant 119 : index
    %13 = vector.load %arg2[%c0_12, %c0_13, %c119] : memref<1x8x384xbf16, #tpu.memory_space<vmem>>, vector<1x8x128xbf16>
    %14 = vector.shape_cast %13 : vector<1x8x128xbf16> to vector<8x128xbf16>
    %c0_14 = arith.constant 0 : index
    %c0_15 = arith.constant 0 : index
    %c127 = arith.constant 127 : index
    %15 = vector.load %arg2[%c0_14, %c0_15, %c127] : memref<1x8x384xbf16, #tpu.memory_space<vmem>>, vector<1x8x128xbf16>
    %16 = vector.shape_cast %15 : vector<1x8x128xbf16> to vector<8x128xbf16>
    %c0_16 = arith.constant 0 : index
    %c0_17 = arith.constant 0 : index
    %c128 = arith.constant 128 : index
    %17 = vector.load %arg2[%c0_16, %c0_17, %c128] : memref<1x8x384xbf16, #tpu.memory_space<vmem>>, vector<1x8x128xbf16>
    %18 = vector.shape_cast %17 : vector<1x8x128xbf16> to vector<8x128xbf16>
    %c0_18 = arith.constant 0 : index
    %c0_19 = arith.constant 0 : index
    %c129 = arith.constant 129 : index
    %19 = vector.load %arg2[%c0_18, %c0_19, %c129] : memref<1x8x384xbf16, #tpu.memory_space<vmem>>, vector<1x8x128xbf16>
    %20 = vector.shape_cast %19 : vector<1x8x128xbf16> to vector<8x128xbf16>
    %c0_20 = arith.constant 0 : index
    %c0_21 = arith.constant 0 : index
    %c137 = arith.constant 137 : index
    %21 = vector.load %arg2[%c0_20, %c0_21, %c137] : memref<1x8x384xbf16, #tpu.memory_space<vmem>>, vector<1x8x128xbf16>
    %22 = vector.shape_cast %21 : vector<1x8x128xbf16> to vector<8x128xbf16>
    %c0_22 = arith.constant 0 : index
    %c0_23 = arith.constant 0 : index
    %c138 = arith.constant 138 : index
    %23 = vector.load %arg2[%c0_22, %c0_23, %c138] : memref<1x8x384xbf16, #tpu.memory_space<vmem>>, vector<1x8x128xbf16>
    %24 = vector.shape_cast %23 : vector<1x8x128xbf16> to vector<8x128xbf16>
    %c0_24 = arith.constant 0 : index
    %c0_25 = arith.constant 0 : index
    %c139 = arith.constant 139 : index
    %25 = vector.load %arg2[%c0_24, %c0_25, %c139] : memref<1x8x384xbf16, #tpu.memory_space<vmem>>, vector<1x8x128xbf16>
    %26 = vector.shape_cast %25 : vector<1x8x128xbf16> to vector<8x128xbf16>
    %27 = tpu.concatenate %10, %12, %14, %16, %18, %20, %22, %24, %26 in 0 : vector<8x128xbf16>, vector<8x128xbf16>, vector<8x128xbf16>, vector<8x128xbf16>, vector<8x128xbf16>, vector<8x128xbf16>, vector<8x128xbf16>, vector<8x128xbf16>, vector<8x128xbf16> -> vector<72x128xbf16>
    %cst_26 = arith.constant dense<0.000000e+00> : vector<8x128xf32>
    %28 = tpu.matmul %0, %27, %cst_26 {dimension_numbers = #tpu.dot_dimension_numbers<[1], [0], [0], [1], [0, 0, 1, 1], [], []>} : vector<8x72xbf16>, vector<72x128xbf16>, vector<8x128xf32> -> vector<8x128xf32>
    %29 = vector.broadcast %1 : vector<8x1xf32> to vector<8x128xf32>
    %30 = arith.addf %28, %29 : vector<8x128xf32>
    %cst_27 = arith.constant 0.000000e+00 : f32
    %31 = vector.broadcast %cst_27 : f32 to vector<8x128xf32>
    %32 = arith.cmpf oge, %30, %31 : vector<8x128xf32>
    %cst_28 = arith.constant 0.00999999977 : f32
    %33 = vector.broadcast %cst_28 : f32 to vector<8x128xf32>
    %34 = arith.mulf %33, %30 : vector<8x128xf32>
    %35 = arith.select %32, %30, %34 : vector<8x128xi1>, vector<8x128xf32>
    %c0_29 = arith.constant 0 : index
    %c128_30 = arith.constant 128 : index
    %36 = vector.load %arg5[%c0_29, %c128_30] : memref<1x384xf32, #tpu.memory_space<vmem>>, vector<1x128xf32>
    %cst_31 = arith.constant 5.000000e-01 : f32
    %37 = vector.broadcast %cst_31 : f32 to vector<1x128xf32>
    %38 = arith.cmpf ogt, %36, %37 : vector<1x128xf32>
    %cst_32 = arith.constant 0.000000e+00 : f32
    %39 = vector.shape_cast %38 : vector<1x128xi1> to vector<1x128xi1>
    %40 = vector.broadcast %39 : vector<1x128xi1> to vector<8x128xi1>
    %41 = vector.broadcast %cst_32 : f32 to vector<8x128xf32>
    %42 = arith.select %40, %35, %41 : vector<8x128xi1>, vector<8x128xf32>
    %43 = arith.truncf %42 : vector<8x128xf32> to vector<8x128xbf16>
    %c0_33 = arith.constant 0 : index
    %c0_34 = arith.constant 0 : index
    %c128_35 = arith.constant 128 : index
    %44 = vector.load %arg6[%c0_33, %c0_34, %c128_35] : memref<1x8x384xbf16, #tpu.memory_space<vmem>>, vector<1x8x128xbf16>
    %45 = vector.shape_cast %44 : vector<1x8x128xbf16> to vector<8x128xbf16>
    %46 = vector.shape_cast %43 : vector<8x128xbf16> to vector<1x8x128xbf16>
    tpu.vector_store %arg6[%c0_33, %c0_34, %c128_35], %46 {strides = array<i32>} : memref<1x8x384xbf16, #tpu.memory_space<vmem>>, vector<1x8x128xbf16>,
    return
  }
  func.func @transform_0(%arg0: i32, %arg1: i32) -> (i32, i32, i32) {
    %c0_i32 = arith.constant 0 : i32
    %c0_i32_0 = arith.constant 0 : i32
    %c0_i32_1 = arith.constant 0 : i32
    return %arg0, %c0_i32, %c0_i32_0 : i32, i32, i32
  }
  func.func @transform_1(%arg0: i32, %arg1: i32) -> (i32, i32) {
    %c0_i32 = arith.constant 0 : i32
    %c0_i32_0 = arith.constant 0 : i32
    return %arg1, %c0_i32 : i32, i32
  }
  func.func @transform_2(%arg0: i32, %arg1: i32) -> (i32, i32) {
    %c0_i32 = arith.constant 0 : i32
    %c0_i32_0 = arith.constant 0 : i32
    return %arg1, %c0_i32 : i32, i32
  }
  func.func @transform_3(%arg0: i32, %arg1: i32) -> (i32, i32) {
    %c0_i32 = arith.constant 0 : i32
    %c0_i32_0 = arith.constant 0 : i32
    %c0_i32_1 = arith.constant 0 : i32
    return %c0_i32, %c0_i32_0 : i32, i32
  }
  func.func @transform_4(%arg0: i32, %arg1: i32) -> (i32, i32, i32) {
    %c0_i32 = arith.constant 0 : i32
    %c0_i32_0 = arith.constant 0 : i32
    return %arg0, %arg1, %c0_i32 : i32, i32, i32
  }
}

module attributes {stable_mosaic.version = 11 : i64} {
  func.func @_conv_lrelu_kernel(%arg0: i32, %arg1: i32, %arg2: memref<1x16x384xbf16, #tpu.memory_space<vmem>>, %arg3: memref<8x64xbf16, #tpu.memory_space<vmem>>, %arg4: memref<8x1xf32, #tpu.memory_space<vmem>>, %arg5: memref<1x384xf32, #tpu.memory_space<vmem>>, %arg6: memref<1x8x384xbf16, #tpu.memory_space<vmem>>) attributes {dimension_semantics = [#tpu.dimension_semantics<parallel>, #tpu.dimension_semantics<parallel>], iteration_bounds = array<i64: 2, 1>, scalar_prefetch = 0 : i64, scratch_operands = 0 : i64, tpu.core_type = #tpu.core_type<tc>, window_params = [{transform_indices = @transform_0, window_bounds = array<i64: 1, 16, 384>}, {transform_indices = @transform_1, window_bounds = array<i64: 8, 64>}, {transform_indices = @transform_2, window_bounds = array<i64: 8, 1>}, {pipeline_mode = #tpu.pipeline_mode<synchronous>, transform_indices = @transform_3, window_bounds = array<i64: 1, 384>}, {transform_indices = @transform_4, window_bounds = array<i64: 1, 8, 384>}]} {
    %c0 = arith.constant 0 : index
    %c0_0 = arith.constant 0 : index
    %0 = vector.load %arg3[%c0, %c0_0] : memref<8x64xbf16, #tpu.memory_space<vmem>>, vector<8x64xbf16>
    %c0_1 = arith.constant 0 : index
    %c0_2 = arith.constant 0 : index
    %1 = vector.load %arg4[%c0_1, %c0_2] : memref<8x1xf32, #tpu.memory_space<vmem>>, vector<8x1xf32>
    %cst = arith.constant 0.000000e+00 : bf16
    %2 = vector.broadcast %cst : bf16 to vector<8x128xbf16>
    %c0_3 = arith.constant 0 : index
    %c0_4 = arith.constant 0 : index
    %c0_5 = arith.constant 0 : index
    %3 = vector.load %arg6[%c0_3, %c0_4, %c0_5] : memref<1x8x384xbf16, #tpu.memory_space<vmem>>, vector<1x8x128xbf16>
    %4 = vector.shape_cast %3 : vector<1x8x128xbf16> to vector<8x128xbf16>
    %5 = vector.shape_cast %2 : vector<8x128xbf16> to vector<1x8x128xbf16>
    tpu.vector_store %arg6[%c0_3, %c0_4, %c0_5], %5 {strides = array<i32>} : memref<1x8x384xbf16, #tpu.memory_space<vmem>>, vector<1x8x128xbf16>,
    %c0_6 = arith.constant 0 : index
    %c0_7 = arith.constant 0 : index
    %c256 = arith.constant 256 : index
    %6 = vector.load %arg6[%c0_6, %c0_7, %c256] : memref<1x8x384xbf16, #tpu.memory_space<vmem>>, vector<1x8x128xbf16>
    %7 = vector.shape_cast %6 : vector<1x8x128xbf16> to vector<8x128xbf16>
    %8 = vector.shape_cast %2 : vector<8x128xbf16> to vector<1x8x128xbf16>
    tpu.vector_store %arg6[%c0_6, %c0_7, %c256], %8 {strides = array<i32>} : memref<1x8x384xbf16, #tpu.memory_space<vmem>>, vector<1x8x128xbf16>,
    %c0_8 = arith.constant 0 : index
    %c0_9 = arith.constant 0 : index
    %c117 = arith.constant 117 : index
    %9 = vector.load %arg2[%c0_8, %c0_9, %c117] : memref<1x16x384xbf16, #tpu.memory_space<vmem>>, vector<1x16x128xbf16>
    %10 = vector.shape_cast %9 : vector<1x16x128xbf16> to vector<16x128xbf16>
    %c0_10 = arith.constant 0 : index
    %c0_11 = arith.constant 0 : index
    %c118 = arith.constant 118 : index
    %11 = vector.load %arg2[%c0_10, %c0_11, %c118] : memref<1x16x384xbf16, #tpu.memory_space<vmem>>, vector<1x16x128xbf16>
    %12 = vector.shape_cast %11 : vector<1x16x128xbf16> to vector<16x128xbf16>
    %c0_12 = arith.constant 0 : index
    %c0_13 = arith.constant 0 : index
    %c127 = arith.constant 127 : index
    %13 = vector.load %arg2[%c0_12, %c0_13, %c127] : memref<1x16x384xbf16, #tpu.memory_space<vmem>>, vector<1x16x128xbf16>
    %14 = vector.shape_cast %13 : vector<1x16x128xbf16> to vector<16x128xbf16>
    %c0_14 = arith.constant 0 : index
    %c0_15 = arith.constant 0 : index
    %c128 = arith.constant 128 : index
    %15 = vector.load %arg2[%c0_14, %c0_15, %c128] : memref<1x16x384xbf16, #tpu.memory_space<vmem>>, vector<1x16x128xbf16>
    %16 = vector.shape_cast %15 : vector<1x16x128xbf16> to vector<16x128xbf16>
    %17 = tpu.concatenate %10, %12, %14, %16 in 0 : vector<16x128xbf16>, vector<16x128xbf16>, vector<16x128xbf16>, vector<16x128xbf16> -> vector<64x128xbf16>
    %cst_16 = arith.constant dense<0.000000e+00> : vector<8x128xf32>
    %18 = tpu.matmul %0, %17, %cst_16 {dimension_numbers = #tpu.dot_dimension_numbers<[1], [0], [0], [1], [0, 0, 1, 1], [], []>} : vector<8x64xbf16>, vector<64x128xbf16>, vector<8x128xf32> -> vector<8x128xf32>
    %19 = vector.broadcast %1 : vector<8x1xf32> to vector<8x128xf32>
    %20 = arith.addf %18, %19 : vector<8x128xf32>
    %cst_17 = arith.constant 0.000000e+00 : f32
    %21 = vector.broadcast %cst_17 : f32 to vector<8x128xf32>
    %22 = arith.cmpf oge, %20, %21 : vector<8x128xf32>
    %cst_18 = arith.constant 0.00999999977 : f32
    %23 = vector.broadcast %cst_18 : f32 to vector<8x128xf32>
    %24 = arith.mulf %23, %20 : vector<8x128xf32>
    %25 = arith.select %22, %20, %24 : vector<8x128xi1>, vector<8x128xf32>
    %c0_19 = arith.constant 0 : index
    %c128_20 = arith.constant 128 : index
    %26 = vector.load %arg5[%c0_19, %c128_20] : memref<1x384xf32, #tpu.memory_space<vmem>>, vector<1x128xf32>
    %cst_21 = arith.constant 5.000000e-01 : f32
    %27 = vector.broadcast %cst_21 : f32 to vector<1x128xf32>
    %28 = arith.cmpf ogt, %26, %27 : vector<1x128xf32>
    %cst_22 = arith.constant 0.000000e+00 : f32
    %29 = vector.shape_cast %28 : vector<1x128xi1> to vector<1x128xi1>
    %30 = vector.broadcast %29 : vector<1x128xi1> to vector<8x128xi1>
    %31 = vector.broadcast %cst_22 : f32 to vector<8x128xf32>
    %32 = arith.select %30, %25, %31 : vector<8x128xi1>, vector<8x128xf32>
    %33 = arith.truncf %32 : vector<8x128xf32> to vector<8x128xbf16>
    %c0_23 = arith.constant 0 : index
    %c0_24 = arith.constant 0 : index
    %c128_25 = arith.constant 128 : index
    %34 = vector.load %arg6[%c0_23, %c0_24, %c128_25] : memref<1x8x384xbf16, #tpu.memory_space<vmem>>, vector<1x8x128xbf16>
    %35 = vector.shape_cast %34 : vector<1x8x128xbf16> to vector<8x128xbf16>
    %36 = vector.shape_cast %33 : vector<8x128xbf16> to vector<1x8x128xbf16>
    tpu.vector_store %arg6[%c0_23, %c0_24, %c128_25], %36 {strides = array<i32>} : memref<1x8x384xbf16, #tpu.memory_space<vmem>>, vector<1x8x128xbf16>,
    return
  }
  func.func @transform_0(%arg0: i32, %arg1: i32) -> (i32, i32, i32) {
    %c0_i32 = arith.constant 0 : i32
    %c0_i32_0 = arith.constant 0 : i32
    %c0_i32_1 = arith.constant 0 : i32
    return %arg0, %c0_i32, %c0_i32_0 : i32, i32, i32
  }
  func.func @transform_1(%arg0: i32, %arg1: i32) -> (i32, i32) {
    %c0_i32 = arith.constant 0 : i32
    %c0_i32_0 = arith.constant 0 : i32
    return %arg1, %c0_i32 : i32, i32
  }
  func.func @transform_2(%arg0: i32, %arg1: i32) -> (i32, i32) {
    %c0_i32 = arith.constant 0 : i32
    %c0_i32_0 = arith.constant 0 : i32
    return %arg1, %c0_i32 : i32, i32
  }
  func.func @transform_3(%arg0: i32, %arg1: i32) -> (i32, i32) {
    %c0_i32 = arith.constant 0 : i32
    %c0_i32_0 = arith.constant 0 : i32
    %c0_i32_1 = arith.constant 0 : i32
    return %c0_i32, %c0_i32_0 : i32, i32
  }
  func.func @transform_4(%arg0: i32, %arg1: i32) -> (i32, i32, i32) {
    %c0_i32 = arith.constant 0 : i32
    %c0_i32_0 = arith.constant 0 : i32
    return %arg0, %arg1, %c0_i32 : i32, i32, i32
  }
}

module attributes {stable_mosaic.version = 11 : i64} {
  func.func @_conv_lrelu_kernel(%arg0: i32, %arg1: i32, %arg2: memref<1x8x384xbf16, #tpu.memory_space<vmem>>, %arg3: memref<8x72xbf16, #tpu.memory_space<vmem>>, %arg4: memref<8x1xf32, #tpu.memory_space<vmem>>, %arg5: memref<1x384xf32, #tpu.memory_space<vmem>>, %arg6: memref<1x8x384xf32, #tpu.memory_space<vmem>>) attributes {dimension_semantics = [#tpu.dimension_semantics<parallel>, #tpu.dimension_semantics<parallel>], iteration_bounds = array<i64: 2, 1>, scalar_prefetch = 0 : i64, scratch_operands = 0 : i64, tpu.core_type = #tpu.core_type<tc>, window_params = [{transform_indices = @transform_0, window_bounds = array<i64: 1, 8, 384>}, {transform_indices = @transform_1, window_bounds = array<i64: 8, 72>}, {transform_indices = @transform_2, window_bounds = array<i64: 8, 1>}, {pipeline_mode = #tpu.pipeline_mode<synchronous>, transform_indices = @transform_3, window_bounds = array<i64: 1, 384>}, {transform_indices = @transform_4, window_bounds = array<i64: 1, 8, 384>}]} {
    %c0 = arith.constant 0 : index
    %c0_0 = arith.constant 0 : index
    %0 = vector.load %arg3[%c0, %c0_0] : memref<8x72xbf16, #tpu.memory_space<vmem>>, vector<8x72xbf16>
    %c0_1 = arith.constant 0 : index
    %c0_2 = arith.constant 0 : index
    %1 = vector.load %arg4[%c0_1, %c0_2] : memref<8x1xf32, #tpu.memory_space<vmem>>, vector<8x1xf32>
    %cst = arith.constant 0.000000e+00 : f32
    %2 = vector.broadcast %cst : f32 to vector<8x128xf32>
    %c0_3 = arith.constant 0 : index
    %c0_4 = arith.constant 0 : index
    %c0_5 = arith.constant 0 : index
    %3 = vector.load %arg6[%c0_3, %c0_4, %c0_5] : memref<1x8x384xf32, #tpu.memory_space<vmem>>, vector<1x8x128xf32>
    %4 = vector.shape_cast %3 : vector<1x8x128xf32> to vector<8x128xf32>
    %5 = vector.shape_cast %2 : vector<8x128xf32> to vector<1x8x128xf32>
    tpu.vector_store %arg6[%c0_3, %c0_4, %c0_5], %5 {strides = array<i32>} : memref<1x8x384xf32, #tpu.memory_space<vmem>>, vector<1x8x128xf32>,
    %c0_6 = arith.constant 0 : index
    %c0_7 = arith.constant 0 : index
    %c256 = arith.constant 256 : index
    %6 = vector.load %arg6[%c0_6, %c0_7, %c256] : memref<1x8x384xf32, #tpu.memory_space<vmem>>, vector<1x8x128xf32>
    %7 = vector.shape_cast %6 : vector<1x8x128xf32> to vector<8x128xf32>
    %8 = vector.shape_cast %2 : vector<8x128xf32> to vector<1x8x128xf32>
    tpu.vector_store %arg6[%c0_6, %c0_7, %c256], %8 {strides = array<i32>} : memref<1x8x384xf32, #tpu.memory_space<vmem>>, vector<1x8x128xf32>,
    %c0_8 = arith.constant 0 : index
    %c0_9 = arith.constant 0 : index
    %c117 = arith.constant 117 : index
    %9 = vector.load %arg2[%c0_8, %c0_9, %c117] : memref<1x8x384xbf16, #tpu.memory_space<vmem>>, vector<1x8x128xbf16>
    %10 = vector.shape_cast %9 : vector<1x8x128xbf16> to vector<8x128xbf16>
    %c0_10 = arith.constant 0 : index
    %c0_11 = arith.constant 0 : index
    %c118 = arith.constant 118 : index
    %11 = vector.load %arg2[%c0_10, %c0_11, %c118] : memref<1x8x384xbf16, #tpu.memory_space<vmem>>, vector<1x8x128xbf16>
    %12 = vector.shape_cast %11 : vector<1x8x128xbf16> to vector<8x128xbf16>
    %c0_12 = arith.constant 0 : index
    %c0_13 = arith.constant 0 : index
    %c119 = arith.constant 119 : index
    %13 = vector.load %arg2[%c0_12, %c0_13, %c119] : memref<1x8x384xbf16, #tpu.memory_space<vmem>>, vector<1x8x128xbf16>
    %14 = vector.shape_cast %13 : vector<1x8x128xbf16> to vector<8x128xbf16>
    %c0_14 = arith.constant 0 : index
    %c0_15 = arith.constant 0 : index
    %c127 = arith.constant 127 : index
    %15 = vector.load %arg2[%c0_14, %c0_15, %c127] : memref<1x8x384xbf16, #tpu.memory_space<vmem>>, vector<1x8x128xbf16>
    %16 = vector.shape_cast %15 : vector<1x8x128xbf16> to vector<8x128xbf16>
    %c0_16 = arith.constant 0 : index
    %c0_17 = arith.constant 0 : index
    %c128 = arith.constant 128 : index
    %17 = vector.load %arg2[%c0_16, %c0_17, %c128] : memref<1x8x384xbf16, #tpu.memory_space<vmem>>, vector<1x8x128xbf16>
    %18 = vector.shape_cast %17 : vector<1x8x128xbf16> to vector<8x128xbf16>
    %c0_18 = arith.constant 0 : index
    %c0_19 = arith.constant 0 : index
    %c129 = arith.constant 129 : index
    %19 = vector.load %arg2[%c0_18, %c0_19, %c129] : memref<1x8x384xbf16, #tpu.memory_space<vmem>>, vector<1x8x128xbf16>
    %20 = vector.shape_cast %19 : vector<1x8x128xbf16> to vector<8x128xbf16>
    %c0_20 = arith.constant 0 : index
    %c0_21 = arith.constant 0 : index
    %c137 = arith.constant 137 : index
    %21 = vector.load %arg2[%c0_20, %c0_21, %c137] : memref<1x8x384xbf16, #tpu.memory_space<vmem>>, vector<1x8x128xbf16>
    %22 = vector.shape_cast %21 : vector<1x8x128xbf16> to vector<8x128xbf16>
    %c0_22 = arith.constant 0 : index
    %c0_23 = arith.constant 0 : index
    %c138 = arith.constant 138 : index
    %23 = vector.load %arg2[%c0_22, %c0_23, %c138] : memref<1x8x384xbf16, #tpu.memory_space<vmem>>, vector<1x8x128xbf16>
    %24 = vector.shape_cast %23 : vector<1x8x128xbf16> to vector<8x128xbf16>
    %c0_24 = arith.constant 0 : index
    %c0_25 = arith.constant 0 : index
    %c139 = arith.constant 139 : index
    %25 = vector.load %arg2[%c0_24, %c0_25, %c139] : memref<1x8x384xbf16, #tpu.memory_space<vmem>>, vector<1x8x128xbf16>
    %26 = vector.shape_cast %25 : vector<1x8x128xbf16> to vector<8x128xbf16>
    %27 = tpu.concatenate %10, %12, %14, %16, %18, %20, %22, %24, %26 in 0 : vector<8x128xbf16>, vector<8x128xbf16>, vector<8x128xbf16>, vector<8x128xbf16>, vector<8x128xbf16>, vector<8x128xbf16>, vector<8x128xbf16>, vector<8x128xbf16>, vector<8x128xbf16> -> vector<72x128xbf16>
    %cst_26 = arith.constant dense<0.000000e+00> : vector<8x128xf32>
    %28 = tpu.matmul %0, %27, %cst_26 {dimension_numbers = #tpu.dot_dimension_numbers<[1], [0], [0], [1], [0, 0, 1, 1], [], []>} : vector<8x72xbf16>, vector<72x128xbf16>, vector<8x128xf32> -> vector<8x128xf32>
    %29 = vector.broadcast %1 : vector<8x1xf32> to vector<8x128xf32>
    %30 = arith.addf %28, %29 : vector<8x128xf32>
    %cst_27 = arith.constant 0.000000e+00 : f32
    %31 = vector.broadcast %cst_27 : f32 to vector<8x128xf32>
    %32 = arith.cmpf oge, %30, %31 : vector<8x128xf32>
    %cst_28 = arith.constant 0.00999999977 : f32
    %33 = vector.broadcast %cst_28 : f32 to vector<8x128xf32>
    %34 = arith.mulf %33, %30 : vector<8x128xf32>
    %35 = arith.select %32, %30, %34 : vector<8x128xi1>, vector<8x128xf32>
    %c0_29 = arith.constant 0 : index
    %c128_30 = arith.constant 128 : index
    %36 = vector.load %arg5[%c0_29, %c128_30] : memref<1x384xf32, #tpu.memory_space<vmem>>, vector<1x128xf32>
    %cst_31 = arith.constant 5.000000e-01 : f32
    %37 = vector.broadcast %cst_31 : f32 to vector<1x128xf32>
    %38 = arith.cmpf ogt, %36, %37 : vector<1x128xf32>
    %cst_32 = arith.constant 0.000000e+00 : f32
    %39 = vector.shape_cast %38 : vector<1x128xi1> to vector<1x128xi1>
    %40 = vector.broadcast %39 : vector<1x128xi1> to vector<8x128xi1>
    %41 = vector.broadcast %cst_32 : f32 to vector<8x128xf32>
    %42 = arith.select %40, %35, %41 : vector<8x128xi1>, vector<8x128xf32>
    %c0_33 = arith.constant 0 : index
    %c0_34 = arith.constant 0 : index
    %c128_35 = arith.constant 128 : index
    %43 = vector.load %arg6[%c0_33, %c0_34, %c128_35] : memref<1x8x384xf32, #tpu.memory_space<vmem>>, vector<1x8x128xf32>
    %44 = vector.shape_cast %43 : vector<1x8x128xf32> to vector<8x128xf32>
    %45 = vector.shape_cast %42 : vector<8x128xf32> to vector<1x8x128xf32>
    tpu.vector_store %arg6[%c0_33, %c0_34, %c128_35], %45 {strides = array<i32>} : memref<1x8x384xf32, #tpu.memory_space<vmem>>, vector<1x8x128xf32>,
    return
  }
  func.func @transform_0(%arg0: i32, %arg1: i32) -> (i32, i32, i32) {
    %c0_i32 = arith.constant 0 : i32
    %c0_i32_0 = arith.constant 0 : i32
    %c0_i32_1 = arith.constant 0 : i32
    return %arg0, %c0_i32, %c0_i32_0 : i32, i32, i32
  }
  func.func @transform_1(%arg0: i32, %arg1: i32) -> (i32, i32) {
    %c0_i32 = arith.constant 0 : i32
    %c0_i32_0 = arith.constant 0 : i32
    return %arg1, %c0_i32 : i32, i32
  }
  func.func @transform_2(%arg0: i32, %arg1: i32) -> (i32, i32) {
    %c0_i32 = arith.constant 0 : i32
    %c0_i32_0 = arith.constant 0 : i32
    return %arg1, %c0_i32 : i32, i32
  }
  func.func @transform_3(%arg0: i32, %arg1: i32) -> (i32, i32) {
    %c0_i32 = arith.constant 0 : i32
    %c0_i32_0 = arith.constant 0 : i32
    %c0_i32_1 = arith.constant 0 : i32
    return %c0_i32, %c0_i32_0 : i32, i32
  }
  func.func @transform_4(%arg0: i32, %arg1: i32) -> (i32, i32, i32) {
    %c0_i32 = arith.constant 0 : i32
    %c0_i32_0 = arith.constant 0 : i32
    return %arg0, %arg1, %c0_i32 : i32, i32, i32
  }
}

</mosaic_0001>

<bundles_post_ra>
// kernel: down_forward.3
= control target key start
LH: loop header
LB: loop body
LE: loop exit
PB: predicated region body
PF: predicated region fallthrough
CT: control target
= control target key end

     0   :  { %s572_s15 = smov 0   ;;  %s574_s16 = smov 0   ;;  %s623_s0 = inlined_call_operand.vmem [shape: bf16[2,16,384], index: 0, kind: input, shape index: {}]   ;;  %s624_s1 = inlined_call_operand.vmem [shape: bf16[8,64], index: 1, kind: input, shape index: {}]   ;;  %s625_s2 = inlined_call_operand.vmem [shape: f32[8,1], index: 2, kind: input, shape index: {}]   ;;  %s626_s3 = inlined_call_operand.vmem [shape: f32[1,384], index: 3, kind: input, shape index: {}]   ;;  %s627_s4 = inlined_call_operand.vmem [shape: bf16[2,8,384], index: 4, kind: output, shape index: {}]  }
   0x1   :  { %s576_s17 = smov 0  }
   0x2 LB: > { %s26_s18 = sadd.s32 1, %s536_s16  ;;  %p465_p0 = scmp.ge.s32.totalorder %s540_s17, 1  ;;  %s540_s17 = sphi %s576_s17, %s14_s17   ;;  %s536_s16 = sphi %s574_s16, %s629_s16   ;;  %s532_s15 = sphi %s572_s15, %s628_s15  }
   0x3   : > { %p28_p1 = scmp.ge.s32.totalorder %s26_s18, 2  ;;  %p194_p2 = scmp.lt.s32.totalorder %s540_s17, 3 }
   0x5   : > { %s631_s18 = smov (%p28_p1, %s26_s18), 0  ;;  %p195_p3 = pnand %p465_p0, %p194_p2 }
   0x6   : > { %p232_p4 = scmp.lt.s32.totalorder (!%p195_p3), %s532_s15, 1  ;;  %s542_s23 = smov (!%p195_p3), 117  }
   0x7   : > { %198 = sbr.rel (%p195_p3) target bundleno = 409 (0x199), region = 36  ;;  %s543_s24 = smov (!%p195_p3), 118  }
   0x8   : > { %s544_s25 = smov (!%p195_p3), 127   ;;  %s545_s26 = smov (!%p195_p3), 11  }
   0xc   : > { %s633_s15 = smov (!%p232_p4, %s532_s15), 1  ;;  %vm281_vm0 = vcmask 965632   ;;  %vm275_vm1 = vcmask 1039360   ;;  %v256_v17 = vld [vmem:[%s625_s2] sm:$0xff]  ;;  %v546_v18 = vmov 0   ;;  %vm309_vm2 = vcmask 89088  }
   0xd   : > { %s486_s19 = smul.u32 24, %s633_s15  ;;  %517 = vset.pattern.permute.xlu0 %v546_v18  ;;  %v255_v28 = vld [vmem:[%s624_s1] sm:$0xf]  ;;  %vm317_vm3 = vcmask 523264  }
   0xe   : > { %s487_s27 = smul.u32 12, %s633_s15  ;;  %v337_v29 = vld [vmem:[%s626_s3 + $0x1] sm:$0x1] }
   0xf   : > { %s236_s22 = scalar_lea.vmem %s623_s0, %s486_s19  ;;  %vm338_vm4 = vcmp.gt.f32.partialorder %v337_v29, 0.5 }
  0x10   : > { %v478_v0 = vld [vmem:[%s236_s22 + $0x4] sm:$0xf]  ;;  %v485_v1 = vld [vmem:[%s236_s22 + $0xc] sm:$0xf0]  ;;  %v470_v6 = vld [vmem:[%s236_s22] sm:$0xf]  ;;  %s600_s30 = scalar_lea.vmem %s627_s4, %s487_s27 }
  0x11   : > { %v479_v2 = vor.u32 %v485_v1, %v478_v0  ;;  %v483_v3 = vld [vmem:[%s236_s22 + $0x4] sm:$0xf]  ;;  %v472_v4 = vld [vmem:[%s236_s22 + $0xc] sm:$0xf0]  ;;  %v484_v7 = vld [vmem:[%s236_s22 + $0x8] sm:$0xf0] }
  0x12   : > { %v475_v5 = vor.u32 %v483_v3, %v472_v4  ;;  %v471_v8 = vor.u32 %v484_v7, %v470_v6  ;;  %257 = vst [vmem:[%s600_s30] sm:$0xf] %v546_v18  ;;  %v339_v30 = vsel %vm338_vm4, 1, %v546_v18 }
  0x13   : > { %288 = vrot.lane.b32.xlu0 %v479_v2, %s542_s23  ;;  %258 = vst [vmem:[%s600_s30 + $0x8] sm:$0xf] %v546_v18  ;;  %v340_v32 = vperm.slane %v339_v30, 0 }
  0x14   : > { %279 = vrot.lane.b32.xlu1 %v475_v5, %s543_s24  ;;  %273 = vrot.lane.b32.xlu2 %v475_v5, %s544_s25 }
  0x15   : > { %vm341_vm6 = vcmp.eq.s32.totalorder %v340_v32, 1 }
  0x1b   : > { %277 = vrot.lane.b32.xlu0 %v471_v8, %s543_s24 }
  0x1c   : > { %271 = vrot.lane.b32.xlu1 %v471_v8, %s544_s25 }
  0x6e   : > { %v274_v11 = vpop.permute.xlu2 %273 }
  0x85   : > { %v289_v9 = vpop.permute.xlu0 %288 }
  0x86   : > { %307 = vrot.lane.b32.xlu2 %v289_v9, %s545_s26  ;;  %v280_v10 = vpop.permute.xlu1 %279 }
  0x87   : > { %305 = vrot.lane.b32.xlu1 %v280_v10, %s545_s26 }
  0x8d   : > { %v278_v12 = vpop.permute.xlu0 %277 }
  0x8e   : > { %v282_v13 = vsel %vm281_vm0, %v278_v12, %v280_v10  ;;  %v272_v14 = vpop.permute.xlu1 %271 }
  0x8f   : > { %303 = vrot.lane.b32.xlu0 %v282_v13, %s545_s26  ;;  %v276_v15 = vsel %vm275_vm1, %v272_v14, %v274_v11  ;;  %295 = vrot.lane.b32.xlu1 %v471_v8, %s545_s26 }
  0x90   : > { %299 = vrot.lane.b32.xlu2 %v276_v15, %s545_s26 }
  0x97   : > { %301 = vrot.lane.b32.xlu0 %v274_v11, %s545_s26 }
  0x98   : > { %297 = vrot.lane.b32.xlu2 %v475_v5, %s545_s26 }
  0x9f   : > { %292 = vperm.xlu0 %517, %v256_v17  }
  0xe0   : > { %v308_v16 = vpop.permute.xlu2 %307 }
  0xe1   : > { %325 = vmatpush.bf16.msra.mxu0 %v308_v16 }
  0xea   : > { %v300_v20 = vpop.permute.xlu2 %299 }
  0xf2   : > { %v298_v23 = vpop.permute.xlu2 %297 }
  0xf9   : > { %v306_v19 = vpop.permute.xlu1 %305 }
 0x101   : > { %v304_v21 = vpop.permute.xlu0 %303  ;;  %v296_v25 = vpop.permute.xlu1 %295 }
 0x102   : > { %v312_v22 = vsel %vm309_vm2, %v304_v21, %v306_v19  ;;  %v310_v27 = vsel %vm309_vm2, %v296_v25, %v298_v23 }
 0x103   : > { %326 = vmatpush.bf16.msra.mxu0 %v312_v22 }
 0x109   : > { %v302_v24 = vpop.permute.xlu0 %301 }
 0x10a   : > { %v311_v26 = vsel %vm309_vm2, %v300_v20, %v302_v24 }
 0x10b   : > { %327 = vmatpush.bf16.msra.mxu0 %v311_v26 }
 0x10f   : > { %328 = vmatpush.bf16.msra.mxu0 %v310_v27 }
 0x111   : > { %v293_v31 = vpop.permute.xlu0 %292 }
 0x112   : > { %480 = vmatmul.msk.bf16.vlgmr.msra.gmra.mxu0 %vm317_vm3, %v255_v28 }
 0x18f   : > { %v330_v33 = vpop.f32.mrf.mxu0 }
 0x190   : > { %v331_v34 = vadd.f32 %v330_v33, %v293_v31 }
 0x192   : > { %vm334_vm5 = vcmp.ge.f32.partialorder %v331_v34, 0.0  ;;  %v335_v35 = vmul.f32 0.01, %v331_v34 }
 0x194   : > { %v336_v36 = vsel %vm334_vm5, %v331_v34, %v335_v35 }
 0x195   : > { %v342_v37 = vsel %vm341_vm6, %v336_v36, 0.0 }
 0x196   : > { %v343_v38 = vpack.c.bf16 %v342_v37, %v342_v37 }
 0x197   : > { %v332_v39 = vpop.f32.mrf.mxu0 }
 0x198   : > { %344 = vst [vmem:[%s600_s30 + $0x4] sm:$0xf] %v343_v38 }
 0x199 PF: > { %s14_s17 = sadd.s32 1, %s540_s17   ;;  %s628_s15 = smov %s536_s16 }
 0x19a   : > { %p11_p5 = scmp.ge.s32.totalorder %s14_s17, 4   ;;  %s629_s16 = smov %s631_s18 }
 0x19c   :  { %13 = sbr.rel (!%p11_p5) target bundleno = 2 (0x2), region = 72 }

// kernel: down_forward.4
= control target key start
LH: loop header
LB: loop body
LE: loop exit
PB: predicated region body
PF: predicated region fallthrough
CT: control target
= control target key end

     0   :  { %s639_s15 = smov 0   ;;  %s641_s16 = smov 0   ;;  %s717_s0 = inlined_call_operand.vmem [shape: bf16[2,8,384], index: 0, kind: input, shape index: {}]   ;;  %s718_s1 = inlined_call_operand.vmem [shape: bf16[8,72], index: 1, kind: input, shape index: {}]   ;;  %s719_s2 = inlined_call_operand.vmem [shape: f32[8,1], index: 2, kind: input, shape index: {}]   ;;  %s720_s3 = inlined_call_operand.vmem [shape: f32[1,384], index: 3, kind: input, shape index: {}]   ;;  %s721_s4 = inlined_call_operand.vmem [shape: bf16[2,8,384], index: 4, kind: output, shape index: {}]  }
   0x1   :  { %s643_s17 = smov 0  }
   0x2 LB: > { %s26_s18 = sadd.s32 1, %s598_s16  ;;  %p537_p0 = scmp.ge.s32.totalorder %s602_s17, 1  ;;  %s602_s17 = sphi %s643_s17, %s14_s17   ;;  %s598_s16 = sphi %s641_s16, %s723_s16   ;;  %s594_s15 = sphi %s639_s15, %s722_s15  }
   0x3   : > { %p28_p1 = scmp.ge.s32.totalorder %s26_s18, 2  ;;  %p194_p2 = scmp.lt.s32.totalorder %s602_s17, 3 }
   0x5   : > { %s725_s18 = smov (%p28_p1, %s26_s18), 0  ;;  %p195_p3 = pnand %p537_p0, %p194_p2 }
   0x6   : > { %p232_p4 = scmp.lt.s32.totalorder (!%p195_p3), %s594_s15, 1  ;;  %s604_s23 = smov (!%p195_p3), 108  }
   0x7   : > { %198 = sbr.rel (%p195_p3) target bundleno = 432 (0x1b0), region = 36  ;;  %s605_s24 = smov (!%p195_p3), 106  }
   0x8   : > { %s606_s25 = smov (!%p195_p3), 107   ;;  %s607_s26 = smov (!%p195_p3), 116  }
   0x9   : > { %s608_s27 = smov (!%p195_p3), 117   ;;  %s609_s28 = smov (!%p195_p3), 126  }
   0xa   : > { %s610_s29 = smov (!%p195_p3), 118   ;;  %s611_s30 = smov (!%p195_p3), 127  }
   0xb   : > { %s612_s5 = smov (!%p195_p3), 11  }
   0xc   : > { %s727_s15 = smov (!%p232_p4, %s594_s15), 1  ;;  %vm319_vm0 = vcmask 1043456   ;;  %vm311_vm1 = vcmask 875520   ;;  %vm305_vm2 = vcmask 883712   ;;  %vm317_vm3 = vcmask 867328   ;;  %v256_v50 = vld [vmem:[%s719_s2] sm:$0xff] }
   0xd   : > { %s543_s19 = smul.u32 12, %s727_s15  ;;  %vm299_vm4 = vcmask 949248   ;;  %vm277_vm5 = vcmask 1031168   ;;  %vm283_vm6 = vcmask 965632   ;;  %vm271_vm7 = vcmask 1039360  }
   0xe   : > { %vm376_vm8 = vcmask 89088   ;;  %v613_v51 = vmov 0   ;;  %v255_v61 = vld [vmem:[%s718_s1] sm:$0xf]  ;;  %vm386_vm9 = vcmask 588800  }
   0xf   : > { %s236_s22 = scalar_lea.vmem %s717_s0, %s543_s19  ;;  %s690_s8 = scalar_lea.vmem %s721_s4, %s543_s19  ;;  %578 = vset.pattern.permute.xlu1 %v613_v51  ;;  %579 = vset.pattern.permute.xlu0 %v613_v51  ;;  %v409_v62 = vld [vmem:[%s720_s3 + $0x1] sm:$0x1] }
  0x10   : > { %v261_v0 = vld [vmem:[%s236_s22 + $0x4] sm:$0xff]  ;;  %257 = vst [vmem:[%s690_s8] sm:$0xf] %v613_v51  ;;  %vm410_vm10 = vcmp.gt.f32.partialorder %v409_v62, 0.5 }
  0x11   : > { %v291_v1 = vunpack.c.l.b16 %v261_v0  ;;  %v292_v3 = vunpack.c.h.b16 %v261_v0  ;;  %v260_v5 = vld [vmem:[%s236_s22 + $0x4] sm:$0xf]  ;;  %258 = vst [vmem:[%s690_s8 + $0x8] sm:$0xf] %v613_v51  ;;  %v411_v63 = vsel %vm410_vm10, 1, %v613_v51 }
  0x12   : > { %v286_v6 = vunpack.c.l.b16 %v260_v5  ;;  %v259_v7 = vld [vmem:[%s236_s22] sm:$0xff] }
  0x13   : > { %v293_v2 = vpack.c.b16 %v291_v1, %v291_v1  ;;  %v294_v4 = vpack.c.b16 %v292_v3, %v292_v3  ;;  %v264_v9 = vunpack.c.h.b16 %v259_v7  ;;  %v263_v10 = vunpack.c.l.b16 %v259_v7 }
  0x14   : > { %v287_v8 = vpack.c.b16 %v286_v6, %v286_v6  ;;  %v412_v1 = vperm.slane %v411_v63, 0 }
  0x15   : > { %301 = vrot.lane.b32.xlu1 %v293_v2, %s604_s23  ;;  %313 = vrot.lane.b32.xlu0 %v293_v2, %s605_s24  ;;  %v266_v11 = vpack.c.b16 %v264_v9, %v264_v9  ;;  %v265_v12 = vpack.c.b16 %v263_v10, %v263_v10 }
  0x16   : > { %307 = vrot.lane.b32.xlu2 %v293_v2, %s606_s25  ;;  %vm413_vm12 = vcmp.eq.s32.totalorder %v412_v1, 1 }
  0x1d   : > { %303 = vrot.lane.b32.xlu1 %v294_v4, %s604_s23  ;;  %315 = vrot.lane.b32.xlu0 %v294_v4, %s605_s24 }
  0x1e   : > { %309 = vrot.lane.b32.xlu2 %v294_v4, %s606_s25 }
  0x25   : > { %297 = vrot.lane.b32.xlu1 %v294_v4, %s607_s26  ;;  %295 = vrot.lane.b32.xlu0 %v293_v2, %s607_s26 }
  0x26   : > { %288 = vrot.lane.b32.xlu2 %v287_v8, %s608_s27 }
  0x2d   : > { %275 = vrot.lane.b32.xlu1 %v266_v11, %s609_s28  ;;  %273 = vrot.lane.b32.xlu0 %v265_v12, %s609_s28 }
  0x2e   : > { %279 = vrot.lane.b32.xlu2 %v265_v12, %s610_s29 }
  0x35   : > { %281 = vrot.lane.b32.xlu0 %v266_v11, %s610_s29  ;;  %267 = vrot.lane.b32.xlu1 %v265_v12, %s611_s30 }
  0x36   : > { %269 = vrot.lane.b32.xlu2 %v266_v11, %s611_s30 }
  0x70   : > { %v308_v13 = vpop.permute.xlu2 %307 }
  0x78   : > { %v310_v17 = vpop.permute.xlu2 %309 }
  0x79   : > { %v312_v18 = vsel %vm311_vm1, %v308_v13, %v310_v17 }
  0x80   : > { %v289_v24 = vpop.permute.xlu2 %288 }
  0x87   : > { %v302_v14 = vpop.permute.xlu1 %301  ;;  %v314_v15 = vpop.permute.xlu0 %313 }
  0x88   : > { %372 = vrot.lane.b32.xlu0 %v314_v15, %s612_s5  ;;  %v339_v16 = vsel %vm319_vm0, %v302_v14, %v308_v13  ;;  %v280_v30 = vpop.permute.xlu2 %279 }
  0x89   : > { %368 = vrot.lane.b32.xlu2 %v339_v16, %s612_s5 }
  0x8f   : > { %v304_v19 = vpop.permute.xlu1 %303  ;;  %v316_v20 = vpop.permute.xlu0 %315 }
  0x90   : > { %v306_v21 = vsel %vm305_vm2, %v302_v14, %v304_v19  ;;  %v318_v22 = vsel %vm317_vm3, %v314_v15, %v316_v20  ;;  %v270_v33 = vpop.permute.xlu2 %269 }
  0x91   : > { %374 = vrot.lane.b32.xlu1 %v318_v22, %s612_s5  ;;  %v342_v23 = vsel %vm319_vm0, %v306_v21, %v312_v18  ;;  %v325_v42 = vsel %vm319_vm0, %v266_v11, %v270_v33 }
  0x92   : > { %370 = vrot.lane.b32.xlu0 %v342_v23, %s612_s5 }
  0x97   : > { %v298_v25 = vpop.permute.xlu1 %297  ;;  %v296_v26 = vpop.permute.xlu0 %295 }
  0x98   : > { %v300_v27 = vsel %vm299_vm4, %v296_v26, %v298_v25  ;;  %v334_v28 = vsel %vm319_vm0, %v289_v24, %v296_v26 }
  0x99   : > { %364 = vrot.lane.b32.xlu1 %v334_v28, %s612_s5  ;;  %v336_v29 = vsel %vm319_vm0, %v289_v24, %v300_v27 }
  0x9a   : > { %366 = vrot.lane.b32.xlu2 %v336_v29, %s612_s5 }
  0x9f   : > { %v276_v31 = vpop.permute.xlu1 %275  ;;  %v274_v32 = vpop.permute.xlu0 %273 }
  0xa0   : > { %v278_v36 = vsel %vm277_vm5, %v274_v32, %v276_v31 }
  0xa7   : > { %v282_v34 = vpop.permute.xlu0 %281  ;;  %v268_v35 = vpop.permute.xlu1 %267 }
  0xa8   : > { %v284_v37 = vsel %vm283_vm6, %v280_v30, %v282_v34  ;;  %v331_v38 = vsel %vm319_vm0, %v276_v31, %v282_v34  ;;  %v272_v39 = vsel %vm271_vm7, %v268_v35, %v270_v33 }
  0xa9   : > { %362 = vrot.lane.b32.xlu1 %v331_v38, %s612_s5  ;;  %v328_v40 = vsel %vm319_vm0, %v278_v36, %v284_v37  ;;  %v322_v41 = vsel %vm319_vm0, %v265_v12, %v272_v39 }
  0xaa   : > { %360 = vrot.lane.b32.xlu0 %v328_v40, %s612_s5  ;;  %356 = vrot.lane.b32.xlu2 %v322_v41, %s612_s5 }
  0xb1   : > { %345 = vperm.xlu1 %578, %v256_v50  }
  0xb2   : > { %358 = vrot.lane.b32.xlu0 %v325_v42, %s612_s5 }
  0xe3   : > { %v369_v44 = vpop.permute.xlu2 %368 }
  0xf4   : > { %v367_v52 = vpop.permute.xlu2 %366 }
  0xfa   : > { %v373_v43 = vpop.permute.xlu0 %372 }
 0x103   : > { %v375_v45 = vpop.permute.xlu1 %374 }
 0x104   : > { %v381_v46 = vsel %vm376_vm8, %v373_v43, %v375_v45  ;;  %v371_v48 = vpop.permute.xlu0 %370  ;;  %v357_v58 = vpop.permute.xlu2 %356 }
 0x105   : > { %v391_v47 = vsel %vm319_vm0, %v381_v46, 0  ;;  %v380_v49 = vsel %vm376_vm8, %v369_v44, %v371_v48 }
 0x106   : > { %396 = vmatpush.bf16.msra.mxu0 %v391_v47 }
 0x10a   : > { %397 = vmatpush.bf16.msra.mxu0 %v380_v49 }
 0x10b   : > { %v365_v53 = vpop.permute.xlu1 %364 }
 0x10c   : > { %v379_v54 = vsel %vm376_vm8, %v365_v53, %v367_v52 }
 0x10e   : > { %398 = vmatpush.bf16.msra.mxu0 %v379_v54 }
 0x11b   : > { %v363_v55 = vpop.permute.xlu1 %362 }
 0x11c   : > { %v361_v56 = vpop.permute.xlu0 %360 }
 0x11d   : > { %v378_v57 = vsel %vm376_vm8, %v361_v56, %v363_v55 }
 0x11e   : > { %399 = vmatpush.bf16.msra.mxu0 %v378_v57 }
 0x123   : > { %v346_v0 = vpop.permute.xlu1 %345 }
 0x124   : > { %v359_v59 = vpop.permute.xlu0 %358 }
 0x125   : > { %v377_v60 = vsel %vm376_vm8, %v357_v58, %v359_v59 }
 0x126   : > { %400 = vmatpush.bf16.msra.mxu0 %v377_v60 }
 0x129   : > { %540 = vmatmul.msk.bf16.vlgmr.msra.gmra.mxu0 %vm386_vm9, %v255_v61 }
 0x1a6   : > { %v402_v2 = vpop.f32.mrf.mxu0 }
 0x1a7   : > { %v403_v3 = vadd.f32 %v402_v2, %v346_v0 }
 0x1a9   : > { %vm406_vm11 = vcmp.ge.f32.partialorder %v403_v3, 0.0  ;;  %v407_v4 = vmul.f32 0.01, %v403_v3 }
 0x1ab   : > { %v408_v5 = vsel %vm406_vm11, %v403_v3, %v407_v4 }
 0x1ac   : > { %v414_v6 = vsel %vm413_vm12, %v408_v5, 0.0 }
 0x1ad   : > { %v415_v7 = vpack.c.bf16 %v414_v6, %v414_v6 }
 0x1ae   : > { %v404_v8 = vpop.f32.mrf.mxu0 }
 0x1af   : > { %416 = vst [vmem:[%s690_s8 + $0x4] sm:$0xf] %v415_v7 }
 0x1b0 PF: > { %s14_s17 = sadd.s32 1, %s602_s17   ;;  %s722_s15 = smov %s598_s16 }
 0x1b1   : > { %p11_p5 = scmp.ge.s32.totalorder %s14_s17, 4   ;;  %s723_s16 = smov %s725_s18 }
 0x1b3   :  { %13 = sbr.rel (!%p11_p5) target bundleno = 2 (0x2), region = 72 }

// kernel: down_forward.5
= control target key start
LH: loop header
LB: loop body
LE: loop exit
PB: predicated region body
PF: predicated region fallthrough
CT: control target
= control target key end

     0   :  { %s641_s15 = smov 0   ;;  %s643_s16 = smov 0   ;;  %s711_s0 = inlined_call_operand.vmem [shape: bf16[2,8,384], index: 0, kind: input, shape index: {}]   ;;  %s712_s1 = inlined_call_operand.vmem [shape: bf16[8,72], index: 1, kind: input, shape index: {}]   ;;  %s713_s2 = inlined_call_operand.vmem [shape: f32[8,1], index: 2, kind: input, shape index: {}]   ;;  %s714_s3 = inlined_call_operand.vmem [shape: f32[1,384], index: 3, kind: input, shape index: {}]   ;;  %s715_s4 = inlined_call_operand.vmem [shape: f32[2,8,384], index: 4, kind: output, shape index: {}]  }
   0x1   :  { %s645_s17 = smov 0  }
   0x2 LB: > { %s26_s18 = sadd.s32 1, %s599_s16  ;;  %p536_p0 = scmp.ge.s32.totalorder %s603_s17, 1  ;;  %s603_s17 = sphi %s645_s17, %s14_s17   ;;  %s599_s16 = sphi %s643_s16, %s717_s16   ;;  %s595_s15 = sphi %s641_s15, %s716_s15  }
   0x3   : > { %p28_p1 = scmp.ge.s32.totalorder %s26_s18, 2  ;;  %p194_p2 = scmp.lt.s32.totalorder %s603_s17, 3 }
   0x5   : > { %s719_s18 = smov (%p28_p1, %s26_s18), 0  ;;  %p195_p3 = pnand %p536_p0, %p194_p2 }
   0x6   : > { %p232_p4 = scmp.lt.s32.totalorder (!%p195_p3), %s595_s15, 1  ;;  %s605_s23 = smov (!%p195_p3), 108  }
   0x7   : > { %198 = sbr.rel (%p195_p3) target bundleno = 431 (0x1af), region = 36  ;;  %s606_s24 = smov (!%p195_p3), 106  }
   0x8   : > { %s607_s25 = smov (!%p195_p3), 107   ;;  %s608_s26 = smov (!%p195_p3), 116  }
   0x9   : > { %s609_s27 = smov (!%p195_p3), 117   ;;  %s610_s28 = smov (!%p195_p3), 126  }
   0xa   : > { %s611_s29 = smov (!%p195_p3), 118   ;;  %s612_s30 = smov (!%p195_p3), 127  }
   0xb   : > { %s613_s5 = smov (!%p195_p3), 11  }
   0xc   : > { %s721_s15 = smov (!%p232_p4, %s595_s15), 1  ;;  %vm319_vm0 = vcmask 1043456   ;;  %vm311_vm1 = vcmask 875520   ;;  %vm305_vm2 = vcmask 883712   ;;  %vm317_vm3 = vcmask 867328   ;;  %v256_v50 = vld [vmem:[%s713_s2] sm:$0xff] }
   0xd   : > { %s542_s19 = smul.u32 12, %s721_s15  ;;  %vm299_vm4 = vcmask 949248   ;;  %vm277_vm5 = vcmask 1031168   ;;  %vm283_vm6 = vcmask 965632   ;;  %vm271_vm7 = vcmask 1039360  }
   0xe   : > { %vm376_vm8 = vcmask 89088   ;;  %v614_v51 = vmov 0   ;;  %v255_v61 = vld [vmem:[%s712_s1] sm:$0xf]  ;;  %vm386_vm9 = vcmask 588800   ;;  %s543_s10 = smul.u32 24, %s721_s15 }
   0xf   : > { %s236_s22 = scalar_lea.vmem %s711_s0, %s542_s19  ;;  %579 = vset.pattern.permute.xlu1 %v614_v51  ;;  %580 = vset.pattern.permute.xlu0 %v614_v51  ;;  %v615_v62 = vmov 0.0   ;;  %v409_v63 = vld [vmem:[%s714_s3 + $0x1] sm:$0x1] }
  0x10   : > { %v261_v0 = vld [vmem:[%s236_s22 + $0x4] sm:$0xff]  ;;  %s253_s13 = scalar_lea.vmem %s715_s4, %s543_s10  ;;  %vm410_vm10 = vcmp.gt.f32.partialorder %v409_v63, 0.5 }
  0x11   : > { %v291_v1 = vunpack.c.l.b16 %v261_v0  ;;  %v292_v3 = vunpack.c.h.b16 %v261_v0  ;;  %v260_v5 = vld [vmem:[%s236_s22 + $0x4] sm:$0xf]  ;;  %257 = vst [vmem:[%s253_s13] sm:$0xff] %v615_v62  ;;  %v411_v0 = vsel %vm410_vm10, 1, %v614_v51 }
  0x12   : > { %v286_v6 = vunpack.c.l.b16 %v260_v5  ;;  %v259_v7 = vld [vmem:[%s236_s22] sm:$0xff]  ;;  %258 = vst [vmem:[%s253_s13 + $0x10] sm:$0xff] %v615_v62 }
  0x13   : > { %v293_v2 = vpack.c.b16 %v291_v1, %v291_v1  ;;  %v294_v4 = vpack.c.b16 %v292_v3, %v292_v3  ;;  %v264_v9 = vunpack.c.h.b16 %v259_v7  ;;  %v263_v10 = vunpack.c.l.b16 %v259_v7 }
  0x14   : > { %v287_v8 = vpack.c.b16 %v286_v6, %v286_v6 }
  0x15   : > { %301 = vrot.lane.b32.xlu1 %v293_v2, %s605_s23  ;;  %313 = vrot.lane.b32.xlu0 %v293_v2, %s606_s24  ;;  %v266_v11 = vpack.c.b16 %v264_v9, %v264_v9  ;;  %v265_v12 = vpack.c.b16 %v263_v10, %v263_v10 }
  0x16   : > { %307 = vrot.lane.b32.xlu2 %v293_v2, %s607_s25 }
  0x1d   : > { %303 = vrot.lane.b32.xlu1 %v294_v4, %s605_s23  ;;  %315 = vrot.lane.b32.xlu0 %v294_v4, %s606_s24 }
  0x1e   : > { %309 = vrot.lane.b32.xlu2 %v294_v4, %s607_s25 }
  0x25   : > { %297 = vrot.lane.b32.xlu1 %v294_v4, %s608_s26  ;;  %295 = vrot.lane.b32.xlu0 %v293_v2, %s608_s26  ;;  %v412_v2 = vperm.slane %v411_v0, 0 }
  0x26   : > { %288 = vrot.lane.b32.xlu2 %v287_v8, %s609_s27 }
  0x27   : > { %vm413_vm11 = vcmp.eq.s32.totalorder %v412_v2, 1 }
  0x2d   : > { %275 = vrot.lane.b32.xlu1 %v266_v11, %s610_s28  ;;  %273 = vrot.lane.b32.xlu0 %v265_v12, %s610_s28 }
  0x2e   : > { %279 = vrot.lane.b32.xlu2 %v265_v12, %s611_s29 }
  0x35   : > { %281 = vrot.lane.b32.xlu0 %v266_v11, %s611_s29  ;;  %267 = vrot.lane.b32.xlu1 %v265_v12, %s612_s30 }
  0x36   : > { %269 = vrot.lane.b32.xlu2 %v266_v11, %s612_s30 }
  0x70   : > { %v308_v13 = vpop.permute.xlu2 %307 }
  0x78   : > { %v310_v17 = vpop.permute.xlu2 %309 }
  0x79   : > { %v312_v18 = vsel %vm311_vm1, %v308_v13, %v310_v17 }
  0x80   : > { %v289_v24 = vpop.permute.xlu2 %288 }
  0x87   : > { %v302_v14 = vpop.permute.xlu1 %301  ;;  %v314_v15 = vpop.permute.xlu0 %313 }
  0x88   : > { %372 = vrot.lane.b32.xlu0 %v314_v15, %s613_s5  ;;  %v339_v16 = vsel %vm319_vm0, %v302_v14, %v308_v13  ;;  %v280_v30 = vpop.permute.xlu2 %279 }
  0x89   : > { %368 = vrot.lane.b32.xlu2 %v339_v16, %s613_s5 }
  0x8f   : > { %v304_v19 = vpop.permute.xlu1 %303  ;;  %v316_v20 = vpop.permute.xlu0 %315 }
  0x90   : > { %v306_v21 = vsel %vm305_vm2, %v302_v14, %v304_v19  ;;  %v318_v22 = vsel %vm317_vm3, %v314_v15, %v316_v20  ;;  %v270_v33 = vpop.permute.xlu2 %269 }
  0x91   : > { %374 = vrot.lane.b32.xlu1 %v318_v22, %s613_s5  ;;  %v342_v23 = vsel %vm319_vm0, %v306_v21, %v312_v18  ;;  %v325_v42 = vsel %vm319_vm0, %v266_v11, %v270_v33 }
  0x92   : > { %370 = vrot.lane.b32.xlu0 %v342_v23, %s613_s5 }
  0x97   : > { %v298_v25 = vpop.permute.xlu1 %297  ;;  %v296_v26 = vpop.permute.xlu0 %295 }
  0x98   : > { %v300_v27 = vsel %vm299_vm4, %v296_v26, %v298_v25  ;;  %v334_v28 = vsel %vm319_vm0, %v289_v24, %v296_v26 }
  0x99   : > { %364 = vrot.lane.b32.xlu1 %v334_v28, %s613_s5  ;;  %v336_v29 = vsel %vm319_vm0, %v289_v24, %v300_v27 }
  0x9a   : > { %366 = vrot.lane.b32.xlu2 %v336_v29, %s613_s5 }
  0x9f   : > { %v276_v31 = vpop.permute.xlu1 %275  ;;  %v274_v32 = vpop.permute.xlu0 %273 }
  0xa0   : > { %v278_v36 = vsel %vm277_vm5, %v274_v32, %v276_v31 }
  0xa7   : > { %v282_v34 = vpop.permute.xlu0 %281  ;;  %v268_v35 = vpop.permute.xlu1 %267 }
  0xa8   : > { %v284_v37 = vsel %vm283_vm6, %v280_v30, %v282_v34  ;;  %v331_v38 = vsel %vm319_vm0, %v276_v31, %v282_v34  ;;  %v272_v39 = vsel %vm271_vm7, %v268_v35, %v270_v33 }
  0xa9   : > { %362 = vrot.lane.b32.xlu1 %v331_v38, %s613_s5  ;;  %v328_v40 = vsel %vm319_vm0, %v278_v36, %v284_v37  ;;  %v322_v41 = vsel %vm319_vm0, %v265_v12, %v272_v39 }
  0xaa   : > { %360 = vrot.lane.b32.xlu0 %v328_v40, %s613_s5  ;;  %356 = vrot.lane.b32.xlu2 %v322_v41, %s613_s5 }
  0xb1   : > { %345 = vperm.xlu1 %579, %v256_v50  }
  0xb2   : > { %358 = vrot.lane.b32.xlu0 %v325_v42, %s613_s5 }
  0xe3   : > { %v369_v44 = vpop.permute.xlu2 %368 }
  0xf4   : > { %v367_v52 = vpop.permute.xlu2 %366 }
  0xfa   : > { %v373_v43 = vpop.permute.xlu0 %372 }
 0x103   : > { %v375_v45 = vpop.permute.xlu1 %374 }
 0x104   : > { %v381_v46 = vsel %vm376_vm8, %v373_v43, %v375_v45  ;;  %v371_v48 = vpop.permute.xlu0 %370  ;;  %v357_v58 = vpop.permute.xlu2 %356 }
 0x105   : > { %v391_v47 = vsel %vm319_vm0, %v381_v46, 0  ;;  %v380_v49 = vsel %vm376_vm8, %v369_v44, %v371_v48 }
 0x106   : > { %396 = vmatpush.bf16.msra.mxu0 %v391_v47 }
 0x10a   : > { %397 = vmatpush.bf16.msra.mxu0 %v380_v49 }
 0x10b   : > { %v365_v53 = vpop.permute.xlu1 %364 }
 0x10c   : > { %v379_v54 = vsel %vm376_vm8, %v365_v53, %v367_v52 }
 0x10e   : > { %398 = vmatpush.bf16.msra.mxu0 %v379_v54 }
 0x11b   : > { %v363_v55 = vpop.permute.xlu1 %362 }
 0x11c   : > { %v361_v56 = vpop.permute.xlu0 %360 }
 0x11d   : > { %v378_v57 = vsel %vm376_vm8, %v361_v56, %v363_v55 }
 0x11e   : > { %399 = vmatpush.bf16.msra.mxu0 %v378_v57 }
 0x123   : > { %v346_v1 = vpop.permute.xlu1 %345 }
 0x124   : > { %v359_v59 = vpop.permute.xlu0 %358 }
 0x125   : > { %v377_v60 = vsel %vm376_vm8, %v357_v58, %v359_v59 }
 0x126   : > { %400 = vmatpush.bf16.msra.mxu0 %v377_v60 }
 0x129   : > { %539 = vmatmul.msk.bf16.vlgmr.msra.gmra.mxu0 %vm386_vm9, %v255_v61 }
 0x1a6   : > { %v402_v3 = vpop.f32.mrf.mxu0 }
 0x1a7   : > { %v403_v4 = vadd.f32 %v402_v3, %v346_v1 }
 0x1a9   : > { %vm406_vm12 = vcmp.ge.f32.partialorder %v403_v4, 0.0  ;;  %v407_v5 = vmul.f32 0.01, %v403_v4 }
 0x1ab   : > { %v408_v6 = vsel %vm406_vm12, %v403_v4, %v407_v5 }
 0x1ac   : > { %v414_v7 = vsel %vm413_vm11, %v408_v6, 0.0 }
 0x1ad   : > { %415 = vst [vmem:[%s253_s13 + $0x8] sm:$0xff] %v414_v7 }
 0x1ae   : > { %v404_v8 = vpop.f32.mrf.mxu0 }
 0x1af PF: > { %s14_s17 = sadd.s32 1, %s603_s17   ;;  %s716_s15 = smov %s599_s16 }
 0x1b0   : > { %p11_p5 = scmp.ge.s32.totalorder %s14_s17, 4   ;;  %s717_s16 = smov %s719_s18 }
 0x1b2   :  { %13 = sbr.rel (!%p11_p5) target bundleno = 2 (0x2), region = 72 }

</bundles_post_ra>
